<compile_context>
chip_gen: v7x
topology: tpu7x:2x2x1
jax: 0.10.0
libtpu: 0.0.40
codegen_flags: <defaults>
</compile_context>

<pallas_src>
import jax
import jax.numpy as jnp
from jax import lax
from jax.experimental import pallas as pl
from jax.experimental.pallas import tpu as pltpu


def _round_up(n, m):
    return -(-n // m) * m


def _vq_kernel(fpT_ref, eT_ref, e_ref, qT_ref):
    """One lane-dense tile of flattened rows.

    fpT_ref : (D_aug, TM)  columns = [x_m ; 1 ; 0...] of the scrambled flatten
    eT_ref  : (K, D_aug)   rows    = [-2*e_k ; |e_k|^2 ; 0...]
    e_ref   : (D, K)       codebook, for the one-hot lookup matmul
    qT_ref  : (D, TM)      quantized rows, lane-dense
    """
    fpT = fpT_ref[...]
    eT = eT_ref[...]
    e = e_ref[...]
    K = eT.shape[0]

    # Fused distance (up to the per-row |x|^2 constant, which cannot change the
    # argmin over K): dist[k, m] = |e_k|^2 - 2 <x_m, e_k>.  Single MXU pass; the
    # old e2-broadcast and *(-2) VPU work are folded into the augmented row.
    dist = jnp.dot(eT, fpT, preferred_element_type=jnp.float32)       # (K, TM)

    # argmin over K (sublane axis): VPU min-tree + sublane reduce, with
    # first-occurrence tie-break exactly like torch.argmin.
    dmin = jnp.min(dist, axis=0, keepdims=True)                        # (1, TM)
    kio = lax.broadcasted_iota(jnp.int32, dist.shape, 0)               # (K, TM)
    idx = jnp.min(jnp.where(dist == dmin, kio, K), axis=0, keepdims=True)
    # NOTE: a NaN column gives an all-false mask -> idx == K -> zero one-hot;
    # this differs from torch.argmin's NaN behaviour (edge case only).

    # Codebook lookup on the MXU; output is already lane-dense (D, TM).
    onehot = (kio == idx).astype(jnp.float32)                          # (K, TM)
    qT_ref[...] = jnp.dot(e, onehot, preferred_element_type=jnp.float32)


def vector_quantizer_forward(x, e_i_ts, *, tile_m=2048):
    """Forward pass of QuickBitsNN VectorQuantizer.

    x: (B, S, D) 'features' with D == embedding_dim; e_i_ts: (D, K) codebook.
    """
    x = x.astype(jnp.float32)
    e_i_ts = e_i_ts.astype(jnp.float32)
    B, S, D = x.shape
    Dk, K = e_i_ts.shape
    assert Dk == D, "x.shape[2] must equal embedding_dim (torch forward requires it)"
    BN = B * S

    # Large, lane-aligned row tiles amortize per-grid-step overhead; pad BN up
    # so every block is full width (padded columns are sliced off afterwards).
    tile = _round_up(min(tile_m, BN), 128)
    BN_pad = _round_up(BN, tile)
    nblk = BN_pad // tile

    # Augmented contraction dim: [x ; 1] against [-2 e_k ; |e_k|^2], zero-padded
    # up to a sublane multiple (zero rows/cols do not change the dot product).
    D_aug = _round_up(D + 1, 8)

    # Exact replica of torch's scrambled flatten x.permute(0,2,1).reshape(-1, D),
    # shipped transposed so rows sit on the 128-wide lane axis.
    # TODO(synk): a strided in-kernel DMA of x could build this tile on the fly
    # and avoid materializing the transposed copy in HBM.
    fpT = jnp.transpose(x, (0, 2, 1)).reshape(BN, D).T                # (D, BN)
    fpT_aug = jnp.concatenate(
        [fpT,
         jnp.ones((1, BN), jnp.float32),
         jnp.zeros((D_aug - D - 1, BN), jnp.float32)], axis=0)        # (D_aug, BN)
    if BN_pad != BN:
        fpT_aug = jnp.pad(fpT_aug, ((0, 0), (0, BN_pad - BN)))

    e2 = jnp.sum(e_i_ts * e_i_ts, axis=0)[:, None]                    # (K, 1)
    eT_aug = jnp.concatenate(
        [-2.0 * e_i_ts.T, e2,
         jnp.zeros((K, D_aug - D - 1), jnp.float32)], axis=1)         # (K, D_aug)

    quantT = pl.pallas_call(
        _vq_kernel,
        out_shape=jax.ShapeDtypeStruct((D, BN_pad), jnp.float32),
        grid_spec=pltpu.PrefetchScalarGridSpec(
            num_scalar_prefetch=0,
            grid=(nblk,),
            in_specs=[
                pl.BlockSpec((D_aug, tile), lambda i: (0, i)),   # x tile (lane-dense)
                pl.BlockSpec((K, D_aug), lambda i: (0, 0)),      # augmented codebook^T
                pl.BlockSpec((D, K), lambda i: (0, 0)),          # codebook (lookup)
            ],
            out_specs=pl.BlockSpec((D, tile), lambda i: (0, i)),  # quantized (lane-dense)
        ),
        compiler_params=pltpu.CompilerParams(
            # Stateless grid -> safe for megacore sharding.
            # TODO(synk): on v7x verify in the trace that both TensorCores are
            # busy; if not, switch this axis to pltpu.CORE_PARALLEL.
            dimension_semantics=("parallel",),
            # 48 MiB: roomy for tile_m <= 4096 yet leaves headroom on v7x (64 MiB VMEM).
            vmem_limit_bytes=48 * 1024 * 1024),
    )(fpT_aug, eT_aug, e_i_ts)

    quantized_x = quantT[:, :BN].T.reshape(B, S, D)

    # Loss stays in the wrapper: XLA fuses the elementwise (x - q)^2 into the
    # output transpose it already performs, so no extra HBM pass and no
    # in-kernel accumulator / padding mask is needed.
    mse = jnp.mean((x - quantized_x) ** 2)
    dictionary_loss = mse     # forward value of ((x.detach() - q) ** 2).mean()
    commitment_loss = mse     # forward value of ((x - q.detach()) ** 2).mean()

    # Straight-through estimator: forward value == quantized_x.
    # TODO(synk): gradients through pallas_call do not reproduce the torch
    # detach() placement; wrap in jax.custom_vjp before differentiating.
    quantized_st = x + lax.stop_gradient(quantized_x - x)
    return {'quantized_features': quantized_st,
            'dictionary_loss': dictionary_loss,
            'commitment_loss': commitment_loss}


def init_e_i_ts(key, embedding_dim, num_embeddings):
    # nn.init.xavier_uniform_ with gain = calculate_gain('relu') = sqrt(2)
    # for a 2D (D, K) tensor: fan_in = K, fan_out = D
    gain = 2.0 ** 0.5
    a = gain * (6.0 / (num_embeddings + embedding_dim)) ** 0.5
    return jax.random.uniform(key, (embedding_dim, num_embeddings),
                              jnp.float32, minval=-a, maxval=a)


if __name__ == "__main__":
    B, S, D, K = 2, 16, 8, 256   # embedding_dim=8 (TPU-friendly), num_embeddings=256
    key = jax.random.PRNGKey(0)
    kx, ke = jax.random.split(key)
    x = jax.random.normal(kx, (B, S, D), dtype=jnp.float32)
    e_i_ts = init_e_i_ts(ke, D, K)

    out = jax.jit(vector_quantizer_forward)(x, e_i_ts)
    jax.block_until_ready(out)

    # Pure-JAX reference of the torch forward.  (The per-row |x|^2 constant is
    # omitted from the distances: it cannot change the argmin over codebook
    # entries, so the reference indices are identical to torch's.)
    flat = jnp.transpose(x, (0, 2, 1)).reshape(-1, D)
    scores = jnp.dot(flat, e_i_ts, precision=jax.lax.Precision.HIGHEST)
    dist = (e_i_ts ** 2).sum(0, keepdims=True) - 2.0 * scores
    idx = jnp.argmin(dist, axis=1).reshape(B, S)
    q_ref = e_i_ts.T[idx]                             # (B, S, D)
    loss_ref = jnp.mean((x - q_ref) ** 2)

    assert jnp.allclose(out['quantized_features'], q_ref, atol=1e-5)
    assert jnp.allclose(out['dictionary_loss'], loss_ref, atol=1e-5)
    assert jnp.allclose(out['commitment_loss'], loss_ref, atol=1e-5)
    print("KERNEL_OK")
</pallas_src>

<mosaic_0001>
module attributes {stable_mosaic.version = 11 : i64} {
  func.func @_vq_kernel(%arg0: i32, %arg1: memref<16x128xf32, #tpu.memory_space<vmem>>, %arg2: memref<256x16xf32, #tpu.memory_space<vmem>>, %arg3: memref<8x256xf32, #tpu.memory_space<vmem>>, %arg4: memref<8x128xf32, #tpu.memory_space<vmem>>) attributes {dimension_semantics = [#tpu.dimension_semantics<parallel>], iteration_bounds = array<i64: 1>, scalar_prefetch = 0 : i64, scratch_operands = 0 : i64, tpu.core_type = #tpu.core_type<tc>, window_params = [{transform_indices = @transform_0, window_bounds = array<i64: 16, 128>}, {pipeline_mode = #tpu.pipeline_mode<synchronous>, transform_indices = @transform_1, window_bounds = array<i64: 256, 16>}, {pipeline_mode = #tpu.pipeline_mode<synchronous>, transform_indices = @transform_2, window_bounds = array<i64: 8, 256>}, {transform_indices = @transform_3, window_bounds = array<i64: 8, 128>}]} {
    %c0 = arith.constant 0 : index
    %c0_0 = arith.constant 0 : index
    %0 = vector.load %arg1[%c0, %c0_0] : memref<16x128xf32, #tpu.memory_space<vmem>>, vector<16x128xf32>
    %c0_1 = arith.constant 0 : index
    %c0_2 = arith.constant 0 : index
    %1 = vector.load %arg2[%c0_1, %c0_2] : memref<256x16xf32, #tpu.memory_space<vmem>>, vector<256x16xf32>
    %c0_3 = arith.constant 0 : index
    %c0_4 = arith.constant 0 : index
    %2 = vector.load %arg3[%c0_3, %c0_4] : memref<8x256xf32, #tpu.memory_space<vmem>>, vector<8x256xf32>
    %cst = arith.constant dense<0.000000e+00> : vector<256x128xf32>
    %3 = tpu.matmul %1, %0, %cst {dimension_numbers = #tpu.dot_dimension_numbers<[1], [0], [0], [1], [0, 0, 1, 1], [], []>} : vector<256x16xf32>, vector<16x128xf32>, vector<256x128xf32> -> vector<256x128xf32>
    %cst_5 = arith.constant dense<0x7F800000> : vector<128xf32>
    %4 = vector.multi_reduction <minimumf>, %3, %cst_5 [0] : vector<256x128xf32> to vector<128xf32>
    %5 = vector.shape_cast %4 : vector<128xf32> to vector<1x128xf32>
    %6 = tpu.iota {dimensions = array<i32: 0>} : vector<256x128xi32>
    %7 = vector.broadcast %5 : vector<1x128xf32> to vector<256x128xf32>
    %8 = arith.cmpf oeq, %3, %7 : vector<256x128xf32>
    %c256_i32 = arith.constant 256 : i32
    %9 = vector.broadcast %c256_i32 : i32 to vector<256x128xi32>
    %10 = arith.select %8, %6, %9 : vector<256x128xi1>, vector<256x128xi32>
    %cst_6 = arith.constant dense<2147483647> : vector<128xi32>
    %11 = vector.multi_reduction <minsi>, %10, %cst_6 [0] : vector<256x128xi32> to vector<128xi32>
    %12 = vector.shape_cast %11 : vector<128xi32> to vector<1x128xi32>
    %13 = vector.broadcast %12 : vector<1x128xi32> to vector<256x128xi32>
    %14 = arith.cmpi eq, %6, %13 : vector<256x128xi32>
    %15 = arith.extui %14 : vector<256x128xi1> to vector<256x128xi32>
    %16 = arith.sitofp %15 : vector<256x128xi32> to vector<256x128xf32>
    %cst_7 = arith.constant dense<0.000000e+00> : vector<8x128xf32>
    %17 = tpu.matmul %2, %16, %cst_7 {dimension_numbers = #tpu.dot_dimension_numbers<[1], [0], [0], [1], [0, 0, 1, 1], [], []>} : vector<8x256xf32>, vector<256x128xf32>, vector<8x128xf32> -> vector<8x128xf32>
    %c0_8 = arith.constant 0 : index
    %c0_9 = arith.constant 0 : index
    %18 = vector.load %arg4[%c0_8, %c0_9] : memref<8x128xf32, #tpu.memory_space<vmem>>, vector<8x128xf32>
    tpu.vector_store %arg4[%c0_8, %c0_9], %17 {strides = array<i32>} : memref<8x128xf32, #tpu.memory_space<vmem>>, vector<8x128xf32>,
    return
  }
  func.func @transform_0(%arg0: i32) -> (i32, i32) {
    %c0_i32 = arith.constant 0 : i32
    %c0_i32_0 = arith.constant 0 : i32
    return %c0_i32, %arg0 : i32, i32
  }
  func.func @transform_1(%arg0: i32) -> (i32, i32) {
    %c0_i32 = arith.constant 0 : i32
    %c0_i32_0 = arith.constant 0 : i32
    %c0_i32_1 = arith.constant 0 : i32
    return %c0_i32, %c0_i32_0 : i32, i32
  }
  func.func @transform_2(%arg0: i32) -> (i32, i32) {
    %c0_i32 = arith.constant 0 : i32
    %c0_i32_0 = arith.constant 0 : i32
    %c0_i32_1 = arith.constant 0 : i32
    return %c0_i32, %c0_i32_0 : i32, i32
  }
  func.func @transform_3(%arg0: i32) -> (i32, i32) {
    %c0_i32 = arith.constant 0 : i32
    %c0_i32_0 = arith.constant 0 : i32
    return %c0_i32, %arg0 : i32, i32
  }
}

</mosaic_0001>

<bundles_post_ra>
// kernel: vector_quantizer_forward.1
= control target key start
LH: loop header
LB: loop body
LE: loop exit
PB: predicated region body
PF: predicated region fallthrough
CT: control target
= control target key end

     0   :  { %vm50_vm0 = vcmask 130048   ;;  %s1617_s0 = inlined_call_operand.vmem [shape: f32[16,128], index: 0, kind: input, shape index: {}]   ;;  %s1618_s1 = inlined_call_operand.vmem [shape: f32[256,16], index: 1, kind: input, shape index: {}]   ;;  %s1619_s2 = inlined_call_operand.vmem [shape: f32[8,256], index: 2, kind: input, shape index: {}]   ;;  %s1620_s3 = inlined_call_operand.vmem [shape: f32[8,128], index: 3, kind: output, shape index: {}]  }
   0x1   :  { %v14_v0 = vld [vmem:[%s1617_s0] sm:$0xff]  ;;  %v15_v1 = vld [vmem:[%s1617_s0 + $0x8] sm:$0xff]  ;;  %v18_v5 = vld [vmem:[%s1618_s1 + $0x10] sm:$0xff] }
   0x2   :  { %v16_v2 = vld [vmem:[%s1618_s1] sm:$0xff]  ;;  %v965_v3 = vpack.c.bf16 %v15_v1, %v14_v0  ;;  %v17_v4 = vld [vmem:[%s1618_s1 + $0x8] sm:$0xff]  ;;  %v19_v6 = vld [vmem:[%s1618_s1 + $0x18] sm:$0xff] }
   0x3   :  { %917 = vmatprep.mubr.msk.f32.mxu0 %vm50_vm0, %v16_v2  ;;  %v20_v7 = vld [vmem:[%s1618_s1 + $0x20] sm:$0xff]  ;;  %v21_v8 = vld [vmem:[%s1618_s1 + $0x28] sm:$0xff]  ;;  %v22_v9 = vld [vmem:[%s1618_s1 + $0x30] sm:$0xff] }
   0x4   :  { %966 = vmatprep.subr.bf16.mxu0 %v965_v3  ;;  %v23_v10 = vld [vmem:[%s1618_s1 + $0x38] sm:$0xff]  ;;  %v24_v11 = vld [vmem:[%s1618_s1 + $0x40] sm:$0xff]  ;;  %v25_v12 = vld [vmem:[%s1618_s1 + $0x48] sm:$0xff] }
   0x5   :  { %968 = vmatpush3.bf16.msra.mxu0 %v965_v3  ;;  %v26_v13 = vld [vmem:[%s1618_s1 + $0x50] sm:$0xff]  ;;  %v27_v14 = vld [vmem:[%s1618_s1 + $0x58] sm:$0xff]  ;;  %v28_v15 = vld [vmem:[%s1618_s1 + $0x60] sm:$0xff] }
   0x6   :  { %v29_v16 = vld [vmem:[%s1618_s1 + $0x68] sm:$0xff]  ;;  %v30_v17 = vld [vmem:[%s1618_s1 + $0x70] sm:$0xff]  ;;  %v31_v18 = vld [vmem:[%s1618_s1 + $0x78] sm:$0xff] }
   0x7   :  { %v32_v19 = vld [vmem:[%s1618_s1 + $0x80] sm:$0xff]  ;;  %v33_v20 = vld [vmem:[%s1618_s1 + $0x88] sm:$0xff]  ;;  %v34_v21 = vld [vmem:[%s1618_s1 + $0x90] sm:$0xff] }
   0x8   :  { %918 = vmatmul.mubr.msk.f32.vlgmr.msra.gmra.mrb[0].mxu0 %vm50_vm0, %v17_v4  ;;  %v35_v22 = vld [vmem:[%s1618_s1 + $0x98] sm:$0xff]  ;;  %v36_v23 = vld [vmem:[%s1618_s1 + $0xa0] sm:$0xff]  ;;  %v37_v24 = vld [vmem:[%s1618_s1 + $0xa8] sm:$0xff] }
   0x9   :  { %920 = vmatprep.mubr.msk.f32.mxu0 %vm50_vm0, %v18_v5  ;;  %v38_v25 = vld [vmem:[%s1618_s1 + $0xb0] sm:$0xff]  ;;  %v39_v26 = vld [vmem:[%s1618_s1 + $0xb8] sm:$0xff]  ;;  %v40_v27 = vld [vmem:[%s1618_s1 + $0xc0] sm:$0xff] }
   0xa   :  { %v41_v28 = vld [vmem:[%s1618_s1 + $0xc8] sm:$0xff]  ;;  %v42_v29 = vld [vmem:[%s1618_s1 + $0xd0] sm:$0xff]  ;;  %v43_v30 = vld [vmem:[%s1618_s1 + $0xd8] sm:$0xff] }
   0xb   :  { %v44_v31 = vld [vmem:[%s1618_s1 + $0xe0] sm:$0xff]  ;;  %v45_v32 = vld [vmem:[%s1618_s1 + $0xe8] sm:$0xff]  ;;  %v46_v33 = vld [vmem:[%s1618_s1 + $0xf0] sm:$0xff] }
   0xc   :  { %921 = vmatmul.mubr.msk.f32.gmra.mrb[2].mxu0 %vm50_vm0, %v19_v6  ;;  %v47_v34 = vld [vmem:[%s1618_s1 + $0xf8] sm:$0xff]  ;;  %v49_v63 = vld [vmem:[%s1619_s2 + $0x8] sm:$0xff] }
   0xd   :  { %923 = vmatprep.mubr.msk.f32.mxu0 %vm50_vm0, %v20_v7  ;;  %737 = vmatprep.mubr.f32.mxu1 %v49_v63 }
  0x10   :  { %924 = vmatmul.mubr.msk.f32.gmra.mrb[4].mxu0 %vm50_vm0, %v21_v8 }
  0x11   :  { %926 = vmatprep.mubr.msk.f32.mxu0 %vm50_vm0, %v22_v9 }
  0x14   :  { %927 = vmatmul.mubr.msk.f32.gmra.mrb[6].mxu0 %vm50_vm0, %v23_v10 }
  0x15   :  { %929 = vmatprep.mubr.msk.f32.mxu0 %vm50_vm0, %v24_v11 }
  0x18   :  { %930 = vmatmul.mubr.msk.f32.gmra.mrb[8].mxu0 %vm50_vm0, %v25_v12 }
  0x19   :  { %932 = vmatprep.mubr.msk.f32.mxu0 %vm50_vm0, %v26_v13 }
  0x1c   :  { %933 = vmatmul.mubr.msk.f32.gmra.mrb[10].mxu0 %vm50_vm0, %v27_v14 }
  0x1d   :  { %935 = vmatprep.mubr.msk.f32.mxu0 %vm50_vm0, %v28_v15 }
  0x20   :  { %936 = vmatmul.mubr.msk.f32.gmra.mrb[12].mxu0 %vm50_vm0, %v29_v16 }
  0x21   :  { %938 = vmatprep.mubr.msk.f32.mxu0 %vm50_vm0, %v30_v17 }
  0x24   :  { %939 = vmatmul.mubr.msk.f32.gmra.mrb[14].mxu0 %vm50_vm0, %v31_v18 }
  0x25   :  { %941 = vmatprep.mubr.msk.f32.mxu0 %vm50_vm0, %v32_v19 }
  0x28   :  { %942 = vmatmul.mubr.msk.f32.gmra.mrb[16].mxu0 %vm50_vm0, %v33_v20 }
  0x29   :  { %944 = vmatprep.mubr.msk.f32.mxu0 %vm50_vm0, %v34_v21 }
  0x2c   :  { %945 = vmatmul.mubr.msk.f32.gmra.mrb[18].mxu0 %vm50_vm0, %v35_v22 }
  0x2d   :  { %947 = vmatprep.mubr.msk.f32.mxu0 %vm50_vm0, %v36_v23 }
  0x30   :  { %948 = vmatmul.mubr.msk.f32.gmra.mrb[20].mxu0 %vm50_vm0, %v37_v24 }
  0x31   :  { %950 = vmatprep.mubr.msk.f32.mxu0 %vm50_vm0, %v38_v25 }
  0x34   :  { %951 = vmatmul.mubr.msk.f32.gmra.mrb[22].mxu0 %vm50_vm0, %v39_v26 }
  0x35   :  { %953 = vmatprep.mubr.msk.f32.mxu0 %vm50_vm0, %v40_v27 }
  0x38   :  { %954 = vmatmul.mubr.msk.f32.gmra.mrb[24].mxu0 %vm50_vm0, %v41_v28 }
  0x39   :  { %956 = vmatprep.mubr.msk.f32.mxu0 %vm50_vm0, %v42_v29 }
  0x3c   :  { %957 = vmatmul.mubr.msk.f32.gmra.mrb[26].mxu0 %vm50_vm0, %v43_v30 }
  0x3d   :  { %959 = vmatprep.mubr.msk.f32.mxu0 %vm50_vm0, %v44_v31 }
  0x40   :  { %960 = vmatmul.mubr.msk.f32.gmra.mrb[28].mxu0 %vm50_vm0, %v45_v32 }
  0x41   :  { %962 = vmatprep.mubr.msk.f32.mxu0 %vm50_vm0, %v46_v33  ;;  %v409_v33 = vlaneseq }
  0x44   :  { %963 = vmatmul.mubr.msk.f32.gmra.mrb[30].mxu0 %vm50_vm0, %v47_v34 }
  0xdb   :  { %v1157_v35 = vpop.f32.mrb[0].mxu0 }
  0xdc   :  { %v1159_v36 = vpop.f32.mrb[1].mxu0 }
  0xdf   :  { %v1161_v37 = vpop.f32.mrb[2].mxu0 }
  0xe0   :  { %v1163_v38 = vpop.f32.mrb[3].mxu0 }
  0xe3   :  { %v1165_v39 = vpop.f32.mrb[4].mxu0 }
  0xe4   :  { %v373_v40 = vmin.f32 %v1157_v35, %v1165_v39  ;;  %v1169_v41 = vpop.f32.mrb[5].mxu0 }
  0xe5   :  { %v372_v42 = vmin.f32 %v1159_v36, %v1169_v41 }
  0xe7   :  { %v1173_v43 = vpop.f32.mrb[6].mxu0 }
  0xe8   :  { %v375_v44 = vmin.f32 %v1161_v37, %v1173_v43  ;;  %v1177_v45 = vpop.f32.mrb[7].mxu0 }
  0xe9   :  { %v374_v46 = vmin.f32 %v1163_v38, %v1177_v45 }
  0xeb   :  { %v1181_v47 = vpop.f32.mrb[8].mxu0 }
  0xec   :  { %v377_v48 = vmin.f32 %v373_v40, %v1181_v47  ;;  %v1184_v49 = vpop.f32.mrb[9].mxu0 }
  0xed   :  { %v376_v50 = vmin.f32 %v372_v42, %v1184_v49  ;;  %v1256_v42 = vshrl.u32 %v409_v33, 7 }
  0xef   :  { %v1187_v51 = vpop.f32.mrb[10].mxu0  ;;  %v1280_v63 = vadd.s32 72, %v1256_v42  ;;  %v1328_v33 = vadd.s32 200, %v1256_v42 }
  0xf0   :  { %v379_v52 = vmin.f32 %v375_v44, %v1187_v51  ;;  %v1190_v53 = vpop.f32.mrb[11].mxu0 }
  0xf1   :  { %v378_v54 = vmin.f32 %v374_v46, %v1190_v53  ;;  %1646 = vst [vmem:[#allocation11_spill] sm:$0xff] %v1328_v33  ;;  %v1351_v33 = vadd.s32 240, %v1256_v42 }
  0xf3   :  { %v1193_v55 = vpop.f32.mrb[12].mxu0  ;;  %1652 = vst [vmem:[#allocation17_spill] sm:$0xff] %v1351_v33 }
  0xf4   :  { %v381_v56 = vmin.f32 %v377_v48, %v1193_v55  ;;  %v1196_v57 = vpop.f32.mrb[13].mxu0  ;;  %v1259_v48 = vadd.s32 8, %v1256_v42 }
  0xf5   :  { %v380_v58 = vmin.f32 %v376_v50, %v1196_v57  ;;  %v1262_v50 = vadd.s32 24, %v1256_v42 }
  0xf7   :  { %v1199_v59 = vpop.f32.mrb[14].mxu0 }
  0xf8   :  { %v383_v60 = vmin.f32 %v379_v52, %v1199_v59  ;;  %v1202_v61 = vpop.f32.mrb[15].mxu0  ;;  %v1265_v52 = vadd.s32 16, %v1256_v42 }
  0xf9   :  { %v382_v62 = vmin.f32 %v378_v54, %v1202_v61  ;;  %v1268_v54 = vadd.s32 40, %v1256_v42 }
  0xfb   :  { %v1208_v0 = vpop.f32.mrb[16].mxu0 }
  0xfc   :  { %v385_v1 = vmin.f32 %v381_v56, %v1208_v0  ;;  %v1211_v2 = vpop.f32.mrb[17].mxu0  ;;  %v1271_v56 = vadd.s32 32, %v1256_v42 }
  0xfd   :  { %v384_v3 = vmin.f32 %v380_v58, %v1211_v2  ;;  %v1274_v58 = vadd.s32 56, %v1256_v42 }
  0xff   :  { %v1214_v4 = vpop.f32.mrb[18].mxu0 }
 0x100   :  { %v387_v5 = vmin.f32 %v383_v60, %v1214_v4  ;;  %v1217_v6 = vpop.f32.mrb[19].mxu0 }
 0x101   :  { %v386_v7 = vmin.f32 %v382_v62, %v1217_v6  ;;  %v1277_v62 = vadd.s32 48, %v1256_v42 }
 0x103   :  { %v1220_v8 = vpop.f32.mrb[20].mxu0 }
 0x104   :  { %v389_v9 = vmin.f32 %v385_v1, %v1220_v8  ;;  %v1223_v10 = vpop.f32.mrb[21].mxu0  ;;  %v1283_v1 = vadd.s32 64, %v1256_v42 }
 0x105   :  { %v388_v11 = vmin.f32 %v384_v3, %v1223_v10  ;;  %v1286_v3 = vadd.s32 88, %v1256_v42 }
 0x107   :  { %v1226_v12 = vpop.f32.mrb[22].mxu0  ;;  %1638 = vst [vmem:[#allocation3_spill] sm:$0xff] %v1286_v3 }
 0x108   :  { %v391_v13 = vmin.f32 %v387_v5, %v1226_v12  ;;  %v1229_v14 = vpop.f32.mrb[23].mxu0  ;;  %v1289_v5 = vadd.s32 80, %v1256_v42 }
 0x109   :  { %v390_v15 = vmin.f32 %v386_v7, %v1229_v14  ;;  %v1292_v7 = vadd.s32 104, %v1256_v42 }
 0x10a   :  { %1639 = vst [vmem:[#allocation4_spill] sm:$0xff] %v1289_v5 }
 0x10b   :  { %v1232_v16 = vpop.f32.mrb[24].mxu0  ;;  %1640 = vst [vmem:[#allocation5_spill] sm:$0xff] %v1292_v7 }
 0x10c   :  { %v393_v17 = vmin.f32 %v389_v9, %v1232_v16  ;;  %v1235_v18 = vpop.f32.mrb[25].mxu0  ;;  %v1295_v9 = vadd.s32 96, %v1256_v42 }
 0x10d   :  { %v392_v19 = vmin.f32 %v388_v11, %v1235_v18 }
 0x10e   :  { %1641 = vst [vmem:[#allocation6_spill] sm:$0xff] %v1295_v9 }
 0x10f   :  { %v1238_v20 = vpop.f32.mrb[26].mxu0 }
 0x110   :  { %v395_v21 = vmin.f32 %v391_v13, %v1238_v20  ;;  %v1241_v22 = vpop.f32.mrb[27].mxu0  ;;  %v1298_v13 = vadd.s32 120, %v1256_v42 }
 0x111   :  { %v394_v23 = vmin.f32 %v390_v15, %v1241_v22  ;;  %v1301_v15 = vadd.s32 112, %v1256_v42 }
 0x112   :  { %1642 = vst [vmem:[#allocation7_spill] sm:$0xff] %v1298_v13 }
 0x113   :  { %v1244_v24 = vpop.f32.mrb[28].mxu0  ;;  %1643 = vst [vmem:[#allocation8_spill] sm:$0xff] %v1301_v15 }
 0x114   :  { %v397_v25 = vmin.f32 %v393_v17, %v1244_v24  ;;  %v1247_v26 = vpop.f32.mrb[29].mxu0  ;;  %v1304_v17 = vadd.s32 136, %v1256_v42 }
 0x115   :  { %v396_v27 = vmin.f32 %v392_v19, %v1247_v26  ;;  %v1307_v19 = vadd.s32 128, %v1256_v42 }
 0x117   :  { %v400_v28 = vmin.f32 %v396_v27, %v397_v25  ;;  %v1250_v29 = vpop.f32.mrb[30].mxu0  ;;  %v1316_v25 = vadd.s32 168, %v1256_v42 }
 0x118   :  { %1637 = vst [vmem:[#allocation2_spill] sm:$0xff] %v1250_v29  ;;  %v399_v30 = vmin.f32 %v395_v21, %v1250_v29  ;;  %v1253_v31 = vpop.f32.mrb[31].mxu0  ;;  %v1310_v21 = vadd.s32 152, %v1256_v42 }
 0x119   :  { %v398_v32 = vmin.f32 %v394_v23, %v1253_v31  ;;  %v1313_v23 = vadd.s32 144, %v1256_v42 }
 0x11b   :  { %v401_v34 = vmin.f32 %v398_v32, %v399_v30  ;;  %v1322_v30 = vadd.s32 184, %v1256_v42  ;;  %v1325_v32 = vadd.s32 176, %v1256_v42 }
 0x11d   :  { %v402_v40 = vmin.f32 %v400_v28, %v401_v34  ;;  %v1319_v28 = vadd.s32 160, %v1256_v42  ;;  %1644 = vst [vmem:[#allocation9_spill] sm:$0xff] %v1322_v30  ;;  %1645 = vst [vmem:[#allocation10_spill] sm:$0xff] %v1325_v32  ;;  %v1331_v34 = vadd.s32 192, %v1256_v42  ;;  %v1345_v30 = vadd.s32 224, %v1256_v42 }
 0x11e   :  { %v1348_v32 = vadd.s32 248, %v1256_v42 }
 0x11f   :  { %v403_v44 = vrot.slane %v402_v40, 4  ;;  %1650 = vst [vmem:[#allocation15_spill] sm:$0xff] %v1345_v30 }
 0x120   :  { %1651 = vst [vmem:[#allocation16_spill] sm:$0xff] %v1348_v32 }
 0x121   :  { %v404_v46 = vmin.f32 %v402_v40, %v403_v44  ;;  %v1334_v40 = vadd.s32 216, %v1256_v42  ;;  %v1337_v44 = vadd.s32 208, %v1256_v42 }
 0x123   :  { %v405_v60 = vrot.slane %v404_v46, 2  ;;  %1647 = vst [vmem:[#allocation12_spill] sm:$0xff] %v1334_v40  ;;  %1648 = vst [vmem:[#allocation13_spill] sm:$0xff] %v1337_v44 }
 0x125   :  { %v406_v11 = vmin.f32 %v404_v46, %v405_v60  ;;  %v1342_v60 = vadd.s32 232, %v1256_v42 }
 0x127   :  { %v407_v27 = vrot.slane %v406_v11, 1  ;;  %1649 = vst [vmem:[#allocation14_spill] sm:$0xff] %v1342_v60 }
 0x129   :  { %v1339_v46 = vmin.f32 %v406_v11, %v407_v27 }
 0x12b   :  { %vm442_vm1 = vcmp.eq.f32.partialorder %v1159_v36, %v1339_v46  ;;  %vm443_vm2 = vcmp.eq.f32.partialorder %v1157_v35, %v1339_v46  ;;  %vm444_vm3 = vcmp.eq.f32.partialorder %v1163_v38, %v1339_v46  ;;  %vm445_vm4 = vcmp.eq.f32.partialorder %v1161_v37, %v1339_v46 }
 0x12c   :  { %vm446_vm5 = vcmp.eq.f32.partialorder %v1169_v41, %v1339_v46  ;;  %vm447_vm6 = vcmp.eq.f32.partialorder %v1165_v39, %v1339_v46  ;;  %vm448_vm7 = vcmp.eq.f32.partialorder %v1177_v45, %v1339_v46  ;;  %vm449_vm8 = vcmp.eq.f32.partialorder %v1173_v43, %v1339_v46 }
 0x12d   :  { %vm450_vm9 = vcmp.eq.f32.partialorder %v1184_v49, %v1339_v46  ;;  %vm467_vm12 = vcmp.eq.f32.partialorder %v1232_v16, %v1339_v46  ;;  %vm468_vm13 = vcmp.eq.f32.partialorder %v1241_v22, %v1339_v46  ;;  %vm469_vm14 = vcmp.eq.f32.partialorder %v1238_v20, %v1339_v46 }
 0x12e   :  { %vm470_vm15 = vcmp.eq.f32.partialorder %v1247_v26, %v1339_v46  ;;  %vm471_vm0 = vcmp.eq.f32.partialorder %v1244_v24, %v1339_v46  ;;  %vm472_vm10 = vcmp.eq.f32.partialorder %v1253_v31, %v1339_v46  ;;  %vm473_vm11 = vcmp.eq.f32.partialorder %v1250_v29, %v1339_v46 }
 0x12f   :  { %v474_v11 = vsel %vm442_vm1, %v1256_v42, 256  ;;  %v475_v27 = vsel %vm443_vm2, %v1259_v48, 256  ;;  %v476_v32 = vsel %vm444_vm3, %v1265_v52, 256  ;;  %v477_v29 = vsel %vm445_vm4, %v1262_v50, 256 }
 0x130   :  { %v478_v36 = vsel %vm446_vm5, %v1271_v56, 256  ;;  %v479_v35 = vsel %vm447_vm6, %v1268_v54, 256  ;;  %v480_v38 = vsel %vm448_vm7, %v1277_v62, 256  ;;  %v481_v37 = vsel %vm449_vm8, %v1274_v58, 256 }
 0x131   :  { %v482_v41 = vsel %vm450_vm9, %v1283_v1, 256  ;;  %vm1653_vm1 = vcmp.eq.f32.partialorder %v1181_v47, %v1339_v46  ;;  %vm1654_vm2 = vcmp.eq.f32.partialorder %v1190_v53, %v1339_v46  ;;  %vm1655_vm3 = vcmp.eq.f32.partialorder %v1187_v51, %v1339_v46 }
 0x132   :  { %v483_v39 = vsel %vm1653_vm1, %v1280_v63, 256  ;;  %v484_v45 = vsel %vm1654_vm2, %v1289_v5, 256  ;;  %v485_v43 = vsel %vm1655_vm3, %v1286_v3, 256  ;;  %vm1656_vm4 = vcmp.eq.f32.partialorder %v1196_v57, %v1339_v46 }
 0x133   :  { %v486_v49 = vsel %vm1656_vm4, %v1295_v9, 256  ;;  %vm1657_vm5 = vcmp.eq.f32.partialorder %v1193_v55, %v1339_v46  ;;  %vm1658_vm6 = vcmp.eq.f32.partialorder %v1202_v61, %v1339_v46  ;;  %vm1659_vm7 = vcmp.eq.f32.partialorder %v1199_v59, %v1339_v46  ;;  %v1672_v9 = vld [vmem:[#allocation16_spill] sm:$0xff] }
 0x134   :  { %v487_v47 = vsel %vm1657_vm5, %v1292_v7, 256  ;;  %v488_v53 = vsel %vm1658_vm6, %v1301_v15, 256  ;;  %v489_v51 = vsel %vm1659_vm7, %v1298_v13, 256  ;;  %vm1660_vm8 = vcmp.eq.f32.partialorder %v1211_v2, %v1339_v46  ;;  %v1666_v13 = vld [vmem:[#allocation10_spill] sm:$0xff]  ;;  %v1668_v15 = vld [vmem:[#allocation9_spill] sm:$0xff]  ;;  %v1671_v7 = vld [vmem:[#allocation11_spill] sm:$0xff] }
 0x135   :  { %v490_v57 = vsel %vm1660_vm8, %v1307_v19, 256  ;;  %vm1661_vm9 = vcmp.eq.f32.partialorder %v1208_v0, %v1339_v46  ;;  %vm1662_vm1 = vcmp.eq.f32.partialorder %v1217_v6, %v1339_v46  ;;  %vm1663_vm2 = vcmp.eq.f32.partialorder %v1214_v4, %v1339_v46 }
 0x136   :  { %v491_v55 = vsel %vm1661_vm9, %v1304_v17, 256  ;;  %v492_v61 = vsel %vm1662_vm1, %v1313_v23, 256  ;;  %v493_v59 = vsel %vm1663_vm2, %v1310_v21, 256  ;;  %vm1664_vm3 = vcmp.eq.f32.partialorder %v1223_v10, %v1339_v46 }
 0x137   :  { %v494_v2 = vsel %vm1664_vm3, %v1319_v28, 256  ;;  %vm1665_vm4 = vcmp.eq.f32.partialorder %v1220_v8, %v1339_v46  ;;  %vm1667_vm5 = vcmp.eq.f32.partialorder %v1229_v14, %v1339_v46  ;;  %vm1669_vm6 = vcmp.eq.f32.partialorder %v1226_v12, %v1339_v46 }
 0x138   :  { %v495_v0 = vsel %vm1665_vm4, %v1316_v25, 256  ;;  %v496_v6 = vsel %vm1667_vm5, %v1666_v13, 256  ;;  %v497_v4 = vsel %vm1669_vm6, %v1668_v15, 256  ;;  %vm1670_vm7 = vcmp.eq.f32.partialorder %v1235_v18, %v1339_v46 }
 0x139   :  { %v498_v10 = vsel %vm1670_vm7, %v1331_v34, 256  ;;  %v499_v8 = vsel %vm467_vm12, %v1671_v7, 256  ;;  %v500_v14 = vsel %vm468_vm13, %v1337_v44, 256  ;;  %v501_v12 = vsel %vm469_vm14, %v1334_v40, 256 }
 0x13a   :  { %v502_v18 = vsel %vm470_vm15, %v1345_v30, 256  ;;  %v503_v16 = vsel %vm471_vm0, %v1342_v60, 256  ;;  %v504_v22 = vsel %vm472_vm10, %v1351_v33, 256  ;;  %v505_v20 = vsel %vm473_vm11, %v1672_v9, 256 }
 0x13b   :  { %vm506_vm12 = vcmp.lt.s32.totalorder %v474_v11, %v478_v36  ;;  %vm508_vm13 = vcmp.lt.s32.totalorder %v475_v27, %v479_v35  ;;  %vm510_vm14 = vcmp.lt.s32.totalorder %v476_v32, %v480_v38  ;;  %vm512_vm8 = vcmp.lt.s32.totalorder %v477_v29, %v481_v37 }
 0x13c   :  { %v507_v26 = vsel %vm506_vm12, %v474_v11, %v478_v36  ;;  %v509_v30 = vsel %vm508_vm13, %v475_v27, %v479_v35  ;;  %v511_v5 = vsel %vm510_vm14, %v476_v32, %v480_v38  ;;  %v513_v40 = vsel %vm512_vm8, %v477_v29, %v481_v37 }
 0x13d   :  { %vm514_vm15 = vcmp.lt.s32.totalorder %v507_v26, %v482_v41  ;;  %vm516_vm0 = vcmp.lt.s32.totalorder %v509_v30, %v483_v39  ;;  %vm518_vm9 = vcmp.lt.s32.totalorder %v511_v5, %v484_v45  ;;  %vm520_vm1 = vcmp.lt.s32.totalorder %v513_v40, %v485_v43 }
 0x13e   :  { %v515_v24 = vsel %vm514_vm15, %v507_v26, %v482_v41  ;;  %v517_v31 = vsel %vm516_vm0, %v509_v30, %v483_v39  ;;  %v519_v33 = vsel %vm518_vm9, %v511_v5, %v484_v45  ;;  %v521_v60 = vsel %vm520_vm1, %v513_v40, %v485_v43 }
 0x13f   :  { %vm522_vm10 = vcmp.lt.s32.totalorder %v515_v24, %v486_v49  ;;  %vm524_vm2 = vcmp.lt.s32.totalorder %v517_v31, %v487_v47  ;;  %vm526_vm3 = vcmp.lt.s32.totalorder %v519_v33, %v488_v53  ;;  %vm528_vm11 = vcmp.lt.s32.totalorder %v521_v60, %v489_v51 }
 0x140   :  { %v523_v3 = vsel %vm522_vm10, %v515_v24, %v486_v49  ;;  %v525_v46 = vsel %vm524_vm2, %v517_v31, %v487_v47  ;;  %v527_v9 = vsel %vm526_vm3, %v519_v33, %v488_v53  ;;  %v529_v44 = vsel %vm528_vm11, %v521_v60, %v489_v51 }
 0x141   :  { %vm530_vm4 = vcmp.lt.s32.totalorder %v523_v3, %v490_v57  ;;  %vm532_vm5 = vcmp.lt.s32.totalorder %v525_v46, %v491_v55  ;;  %vm534_vm6 = vcmp.lt.s32.totalorder %v527_v9, %v492_v61  ;;  %vm536_vm7 = vcmp.lt.s32.totalorder %v529_v44, %v493_v59 }
 0x142   :  { %v531_v29 = vsel %vm530_vm4, %v523_v3, %v490_v57  ;;  %v533_v32 = vsel %vm532_vm5, %v525_v46, %v491_v55  ;;  %v535_v11 = vsel %vm534_vm6, %v527_v9, %v492_v61  ;;  %v537_v27 = vsel %vm536_vm7, %v529_v44, %v493_v59 }
 0x143   :  { %vm538_vm12 = vcmp.lt.s32.totalorder %v531_v29, %v494_v2  ;;  %vm540_vm13 = vcmp.lt.s32.totalorder %v533_v32, %v495_v0  ;;  %vm542_vm14 = vcmp.lt.s32.totalorder %v535_v11, %v496_v6  ;;  %vm544_vm8 = vcmp.lt.s32.totalorder %v537_v27, %v497_v4 }
 0x144   :  { %v539_v5 = vsel %vm538_vm12, %v531_v29, %v494_v2  ;;  %v541_v30 = vsel %vm540_vm13, %v533_v32, %v495_v0  ;;  %v543_v40 = vsel %vm542_vm14, %v535_v11, %v496_v6  ;;  %v545_v36 = vsel %vm544_vm8, %v537_v27, %v497_v4 }
 0x145   :  { %vm546_vm15 = vcmp.lt.s32.totalorder %v539_v5, %v498_v10  ;;  %vm548_vm0 = vcmp.lt.s32.totalorder %v541_v30, %v499_v8  ;;  %vm550_vm9 = vcmp.lt.s32.totalorder %v543_v40, %v500_v14  ;;  %vm552_vm1 = vcmp.lt.s32.totalorder %v545_v36, %v501_v12 }
 0x146   :  { %v547_v33 = vsel %vm546_vm15, %v539_v5, %v498_v10  ;;  %v549_v60 = vsel %vm548_vm0, %v541_v30, %v499_v8  ;;  %v551_v35 = vsel %vm550_vm9, %v543_v40, %v500_v14  ;;  %v553_v38 = vsel %vm552_vm1, %v545_v36, %v501_v12 }
 0x147   :  { %vm554_vm10 = vcmp.lt.s32.totalorder %v547_v33, %v502_v18  ;;  %vm556_vm2 = vcmp.lt.s32.totalorder %v549_v60, %v503_v16  ;;  %vm558_vm3 = vcmp.lt.s32.totalorder %v551_v35, %v504_v22  ;;  %vm560_vm11 = vcmp.lt.s32.totalorder %v553_v38, %v505_v20 }
 0x148   :  { %v555_v9 = vsel %vm554_vm10, %v547_v33, %v502_v18  ;;  %v557_v44 = vsel %vm556_vm2, %v549_v60, %v503_v16  ;;  %v559_v37 = vsel %vm558_vm3, %v551_v35, %v504_v22  ;;  %v561_v41 = vsel %vm560_vm11, %v553_v38, %v505_v20 }
 0x149   :  { %vm562_vm4 = vcmp.lt.s32.totalorder %v555_v9, %v557_v44  ;;  %vm564_vm5 = vcmp.lt.s32.totalorder %v559_v37, %v561_v41  ;;  %v1002_v61 = vmov 1.0|1.0  }
 0x14a   :  { %v563_v39 = vsel %vm562_vm4, %v555_v9, %v557_v44  ;;  %v565_v45 = vsel %vm564_vm5, %v559_v37, %v561_v41 }
 0x14b   :  { %vm566_vm6 = vcmp.lt.s32.totalorder %v563_v39, %v565_v45 }
 0x14c   :  { %v567_v43 = vsel %vm566_vm6, %v563_v39, %v565_v45 }
 0x14d   :  { %v568_v49 = vrot.slane %v567_v43, 4 }
 0x14f   :  { %vm569_vm7 = vcmp.lt.s32.totalorder %v567_v43, %v568_v49 }
 0x150   :  { %v570_v47 = vsel %vm569_vm7, %v567_v43, %v568_v49 }
 0x151   :  { %v571_v53 = vrot.slane %v570_v47, 2 }
 0x153   :  { %vm572_vm12 = vcmp.lt.s32.totalorder %v570_v47, %v571_v53 }
 0x154   :  { %v573_v51 = vsel %vm572_vm12, %v570_v47, %v571_v53 }
 0x155   :  { %v574_v57 = vrot.slane %v573_v51, 1 }
 0x157   :  { %vm575_vm13 = vcmp.lt.s32.totalorder %v573_v51, %v574_v57 }
 0x158   :  { %v1545_v55 = vsel %vm575_vm13, %v573_v51, %v574_v57 }
 0x159   :  { %vm593_vm14 = vcmp.eq.s32.totalorder %v1307_v19, %v1545_v55  ;;  %vm594_vm8 = vcmp.eq.s32.totalorder %v1304_v17, %v1545_v55  ;;  %vm577_vm15 = vcmp.eq.s32.totalorder %v1256_v42, %v1545_v55  ;;  %vm578_vm0 = vcmp.eq.s32.totalorder %v1259_v48, %v1545_v55  ;;  %v1674_v42 = vld [vmem:[#allocation13_spill] sm:$0xff]  ;;  %v1675_v48 = vld [vmem:[#allocation12_spill] sm:$0xff] }
 0x15a   :  { %vm969_vm9 = vmpackc.low %vm594_vm8, %vm593_vm14  ;;  %vm595_vm1 = vcmp.eq.s32.totalorder %v1313_v23, %v1545_v55  ;;  %vm596_vm10 = vcmp.eq.s32.totalorder %v1310_v21, %v1545_v55  ;;  %vm579_vm11 = vcmp.eq.s32.totalorder %v1265_v52, %v1545_v55  ;;  %vm580_vm4 = vcmp.eq.s32.totalorder %v1262_v50, %v1545_v55  ;;  %v1676_v50 = vld [vmem:[#allocation4_spill] sm:$0xff]  ;;  %v1677_v52 = vld [vmem:[#allocation3_spill] sm:$0xff] }
 0x15b   :  { %970 = vmatprep.subr.msk.bf16.mxu1 %vm969_vm9, %v1002_v61  ;;  %vm971_vm2 = vmpackc.low %vm578_vm0, %vm577_vm15  ;;  %vm597_vm5 = vcmp.eq.s32.totalorder %v1319_v28, %v1545_v55  ;;  %vm598_vm6 = vcmp.eq.s32.totalorder %v1316_v25, %v1545_v55  ;;  %vm581_vm13 = vcmp.eq.s32.totalorder %v1271_v56, %v1545_v55  ;;  %vm582_vm14 = vcmp.eq.s32.totalorder %v1268_v54, %v1545_v55  ;;  %v1678_v54 = vld [vmem:[#allocation15_spill] sm:$0xff]  ;;  %v1679_v56 = vld [vmem:[#allocation14_spill] sm:$0xff] }
 0x15c   :  { %972 = vmatpush3.bf16.msk.msra.mxu1 %vm971_vm2, %v1002_v61  ;;  %vm973_vm3 = vmpackc.low %vm596_vm10, %vm595_vm1  ;;  %vm599_vm8 = vcmp.eq.s32.totalorder %v1666_v13, %v1545_v55  ;;  %vm600_vm15 = vcmp.eq.s32.totalorder %v1668_v15, %v1545_v55  ;;  %vm583_vm1 = vcmp.eq.s32.totalorder %v1277_v62, %v1545_v55  ;;  %vm584_vm10 = vcmp.eq.s32.totalorder %v1274_v58, %v1545_v55  ;;  %v1680_v58 = vld [vmem:[#allocation6_spill] sm:$0xff]  ;;  %v1681_v62 = vld [vmem:[#allocation5_spill] sm:$0xff] }
 0x15d   :  { %974 = vmatprep.subr.msk.bf16.mxu1 %vm973_vm3, %v1002_v61  ;;  %vm975_vm7 = vmpackc.low %vm580_vm4, %vm579_vm11  ;;  %vm601_vm2 = vcmp.eq.s32.totalorder %v1331_v34, %v1545_v55  ;;  %vm602_vm3 = vcmp.eq.s32.totalorder %v1671_v7, %v1545_v55  ;;  %v1684_v7 = vld [vmem:[#allocation8_spill] sm:$0xff]  ;;  %v1685_v13 = vld [vmem:[#allocation7_spill] sm:$0xff] }
 0x15e   :  { %vm977_vm12 = vmpackc.low %vm598_vm6, %vm597_vm5  ;;  %vm585_vm5 = vcmp.eq.s32.totalorder %v1283_v1, %v1545_v55  ;;  %vm586_vm6 = vcmp.eq.s32.totalorder %v1280_v63, %v1545_v55  ;;  %v1682_v63 = vld [vmem:[#allocation17_spill] sm:$0xff]  ;;  %v1683_v1 = vld [vmem:[#allocation16_spill] sm:$0xff] }
 0x15f   :  { %vm979_vm0 = vmpackc.low %vm582_vm14, %vm581_vm13  ;;  %v48_v15 = vld [vmem:[%s1619_s2] sm:$0xff] }
 0x160   :  { %976 = vmatpush3.bf16.msk.msra.mxu1 %vm975_vm7, %v1002_v61  ;;  %vm981_vm9 = vmpackc.low %vm600_vm15, %vm599_vm8  ;;  %vm603_vm7 = vcmp.eq.s32.totalorder %v1674_v42, %v1545_v55  ;;  %vm587_vm8 = vcmp.eq.s32.totalorder %v1676_v50, %v1545_v55  ;;  %vm588_vm15 = vcmp.eq.s32.totalorder %v1677_v52, %v1545_v55 }
 0x161   :  { %978 = vmatprep.subr.msk.bf16.mxu1 %vm977_vm12, %v1002_v61  ;;  %vm983_vm11 = vmpackc.low %vm584_vm10, %vm583_vm1  ;;  %vm604_vm12 = vcmp.eq.s32.totalorder %v1675_v48, %v1545_v55 }
 0x162   :  { %vm985_vm4 = vmpackc.low %vm602_vm3, %vm601_vm2  ;;  %vm589_vm2 = vcmp.eq.s32.totalorder %v1680_v58, %v1545_v55  ;;  %vm590_vm3 = vcmp.eq.s32.totalorder %v1681_v62, %v1545_v55 }
 0x163   :  { %vm987_vm13 = vmpackc.low %vm586_vm6, %vm585_vm5 }
 0x164   :  { %980 = vmatpush3.bf16.msk.msra.mxu1 %vm979_vm0, %v1002_v61  ;;  %vm989_vm14 = vmpackc.low %vm604_vm12, %vm603_vm7  ;;  %vm605_vm0 = vcmp.eq.s32.totalorder %v1678_v54, %v1545_v55  ;;  %vm591_vm7 = vcmp.eq.s32.totalorder %v1684_v7, %v1545_v55  ;;  %vm592_vm12 = vcmp.eq.s32.totalorder %v1685_v13, %v1545_v55 }
 0x165   :  { %982 = vmatprep.subr.msk.bf16.mxu1 %vm981_vm9, %v1002_v61  ;;  %vm606_vm9 = vcmp.eq.s32.totalorder %v1679_v56, %v1545_v55  ;;  %vm991_vm1 = vmpackc.low %vm588_vm15, %vm587_vm8 }
 0x166   :  { %vm993_vm10 = vmpackc.low %vm606_vm9, %vm605_vm0 }
 0x167   :  { %vm995_vm5 = vmpackc.low %vm590_vm3, %vm589_vm2 }
 0x168   :  { %984 = vmatpush3.bf16.msk.msra.mxu1 %vm983_vm11, %v1002_v61  ;;  %vm607_vm11 = vcmp.eq.s32.totalorder %v1682_v63, %v1545_v55 }
 0x169   :  { %986 = vmatprep.subr.msk.bf16.mxu1 %vm985_vm4, %v1002_v61  ;;  %vm608_vm4 = vcmp.eq.s32.totalorder %v1683_v1, %v1545_v55 }
 0x16a   :  { %vm997_vm6 = vmpackc.low %vm608_vm4, %vm607_vm11 }
 0x16c   :  { %988 = vmatpush3.bf16.msk.msra.mxu1 %vm987_vm13, %v1002_v61  ;;  %vm999_vm13 = vmpackc.low %vm592_vm12, %vm591_vm7 }
 0x16d   :  { %990 = vmatprep.subr.msk.bf16.mxu1 %vm989_vm14, %v1002_v61 }
 0x170   :  { %992 = vmatpush3.bf16.msk.msra.mxu1 %vm991_vm1, %v1002_v61 }
 0x171   :  { %994 = vmatprep.subr.msk.bf16.mxu1 %vm993_vm10, %v1002_v61 }
 0x174   :  { %996 = vmatpush3.bf16.msk.msra.mxu1 %vm995_vm5, %v1002_v61 }
 0x175   :  { %998 = vmatprep.subr.msk.bf16.mxu1 %vm997_vm6, %v1002_v61 }
 0x178   :  { %1000 = vmatpush3.bf16.msk.msra.mxu1 %vm999_vm13, %v1002_v61 }
 0x17b   :  { %738 = vmatmul.mubr.f32.vlgmr.msra.gmra.mrb[0].mxu1 %v48_v15 }
 0x24e   :  { %v910_v17 = vpop.f32.mrb[0].mxu1 }
 0x24f   :  { %v911_v19 = vpop.f32.mrb[1].mxu1 }
 0x250   :  { %v912_v21 = vadd.f32 %v911_v19, %v910_v17 }
 0x252   :  { %743 = vst [vmem:[%s1620_s3] sm:$0xff] %v912_v21 }

</bundles_post_ra>
